<compile_context>
chip_gen: v7x
topology: tpu7x:2x2x1
jax: 0.10.0
libtpu: 0.0.40
codegen_flags: <defaults>
</compile_context>

<pallas_src>
import functools

import jax
import jax.numpy as jnp
from jax import lax
from jax.experimental import pallas as pl
from jax.experimental.pallas import tpu as pltpu


def _chip_config():
    """Per-generation tile size / VMEM budget / core split (safe defaults)."""
    kind = ""
    try:
        dev = jax.devices()[0]
        if dev.platform == "tpu":
            kind = (getattr(dev, "device_kind", "") or "").lower()
    except Exception:
        pass
    if "v6" in kind:
        # 1 TC, 128 MiB physical VMEM: big tiles amortize per-step overhead.
        return {"tile_bytes": 8 << 20, "vmem_limit": 96 << 20, "max_cores": 1}
    if "v7" in kind or "7x" in kind:
        # 2 TCs but only 64 MiB VMEM per TC: medium tiles + core split.
        return {"tile_bytes": 4 << 20, "vmem_limit": 48 << 20, "max_cores": 2}
    if "v5" in kind:
        return {"tile_bytes": 4 << 20, "vmem_limit": 64 << 20, "max_cores": 1}
    # Unknown chip / interpret mode: conservative.
    return {"tile_bytes": 4 << 20, "vmem_limit": 48 << 20, "max_cores": 1}


def _kpmse_kernel(pred_ref, gt_ref, w_ref, out_ref, acc_ref, *,
                  use_target_weight, total_rows, rows_per_block,
                  blocks_per_core, needs_mask):
    c = pl.program_id(0)               # core split (size 1 on single-TC chips)
    i = pl.program_id(1)               # row-block within core (reduction axis)
    ni = pl.num_programs(1)

    @pl.when(i == 0)
    def _():
        acc_ref[...] = jnp.zeros_like(acc_ref)

    d = pred_ref[...].astype(jnp.float32) - gt_ref[...].astype(jnp.float32)
    if use_target_weight:
        d = d * w_ref[...].astype(jnp.float32)     # (TR, 1) broadcast over HW
    dsq = d * d

    if needs_mask:
        # Rows past total_rows in the (globally last, partial) block hold stale
        # VMEM.  Use a select, NOT a multiplicative mask (0 * NaN == NaN).
        row_base = (c * blocks_per_core + i) * rows_per_block
        row_ids = lax.broadcasted_iota(jnp.int32, (rows_per_block, 1), 0) + row_base
        dsq = jnp.where(row_ids < total_rows, dsq, 0.0)

    # Sublane (XLU-slot) reduce into a single-row f32 accumulator: keeps the
    # scratch footprint at one row so VMEM goes to the pipelined input tiles.
    acc_ref[...] += jnp.sum(dsq, axis=0, keepdims=True)

    @pl.when(i == ni - 1)
    def _():
        partial = jnp.sum(acc_ref[...])            # one cross-lane reduce / core
        out_ref[...] = jnp.broadcast_to(partial, out_ref.shape).astype(out_ref.dtype)


def keypoints_mse_loss(output, target, weights, use_target_weight=True):
    """output, target: (B, K, H, W); weights: (B, K, 1). Returns scalar f32 loss."""
    B, K, H, W = output.shape
    HW = H * W
    BK = B * K
    itemsize = jnp.dtype(output.dtype).itemsize

    cfg = _chip_config()

    # Contiguous (free) reshapes — loss is symmetric over the flat row index,
    # so the NCHW memory order is reused directly (no HBM transpose).
    pred = output.reshape(BK, HW)
    gt = target.reshape(BK, HW)
    w = weights.reshape(BK, 1)

    # Row-block size: 16-aligned (clean bf16 sublane packing) and sized so one
    # input tile is ~cfg['tile_bytes'], never exceeding the real row count.
    align = 16
    if BK <= align:
        tr = BK                                    # full first dim: always legal
    else:
        rows_budget = max(align, cfg["tile_bytes"] // (HW * itemsize))
        tr = min(rows_budget // align * align, BK // align * align)
        tr = max(tr, align)
    nb = pl.cdiv(BK, tr)

    # Core split only when it divides evenly: a padded/duplicate block would
    # cost a full tile of HBM traffic that is then 100% masked away.
    ncore = cfg["max_cores"]
    if ncore > 1 and nb % ncore != 0:
        ncore = 1
    bpc = nb // ncore

    needs_mask = (nb * tr) != BK                   # only the last block is partial

    kernel = functools.partial(
        _kpmse_kernel,
        use_target_weight=use_target_weight,
        total_rows=BK,
        rows_per_block=tr,
        blocks_per_core=bpc,
        needs_mask=needs_mask,
    )

    def row_block_map(c, i):
        return (c * bpc + i, 0)

    if ncore > 1:
        dim_sem = (getattr(pltpu, "CORE_PARALLEL", "parallel"),
                   getattr(pltpu, "ARBITRARY", "arbitrary"))
    else:
        dim_sem = ("arbitrary", "arbitrary")

    flops = 4 * BK * HW
    bytes_accessed = 2 * BK * HW * itemsize + ncore * 8 * 128 * 4
    if use_target_weight:
        bytes_accessed += BK * jnp.dtype(weights.dtype).itemsize

    out = pl.pallas_call(
        kernel,
        out_shape=jax.ShapeDtypeStruct((ncore, 8, 128), jnp.float32),
        grid_spec=pltpu.PrefetchScalarGridSpec(
            num_scalar_prefetch=0,
            grid=(ncore, bpc),
            in_specs=[
                pl.BlockSpec((tr, HW), row_block_map),
                pl.BlockSpec((tr, HW), row_block_map),
                pl.BlockSpec((tr, 1), row_block_map),   # small per-block weight column
            ],
            out_specs=pl.BlockSpec((1, 8, 128), lambda c, i: (c, 0, 0)),
            scratch_shapes=[pltpu.VMEM((1, HW), jnp.float32)],
        ),
        compiler_params=pltpu.CompilerParams(
            dimension_semantics=dim_sem,
            vmem_limit_bytes=cfg["vmem_limit"],
        ),
        cost_estimate=pl.CostEstimate(
            flops=flops, transcendentals=0, bytes_accessed=bytes_accessed),
    )(pred, gt, w)

    total = jnp.sum(out[:, 0, 0])                  # add per-core partials
    return 0.5 * total / jnp.float32(BK * HW)


def _reference(output, target, weights, use_target_weight=True):
    B, K, H, W = output.shape
    p = output.reshape(B, K, -1).astype(jnp.float32)
    g = target.reshape(B, K, -1).astype(jnp.float32)
    loss = 0.0
    for idx in range(K):
        hp = p[:, idx, :]
        hg = g[:, idx, :]
        if use_target_weight:
            wk = weights[:, idx].astype(jnp.float32)     # (B, 1)
            hp = hp * wk
            hg = hg * wk
        loss += 0.5 * jnp.mean((hp - hg) ** 2)
    return loss / K


if __name__ == "__main__":
    def check(B, K, H, W, use_w, dtype=jnp.float32, seed=0):
        k1, k2, k3 = jax.random.split(jax.random.PRNGKey(seed), 3)
        output = jax.random.normal(k1, (B, K, H, W), dtype=jnp.float32).astype(dtype)
        target = jax.random.normal(k2, (B, K, H, W), dtype=jnp.float32).astype(dtype)
        weights = jax.random.uniform(k3, (B, K, 1), dtype=jnp.float32)
        loss = jax.block_until_ready(keypoints_mse_loss(output, target, weights, use_w))
        ref = _reference(output, target, weights, use_w)
        assert bool(jnp.isfinite(loss)), (B, K, use_w, dtype, loss)
        assert jnp.allclose(loss, ref, rtol=1e-5, atol=1e-6), (B, K, use_w, dtype, loss, ref)

    # Even case, weighted + unweighted.
    check(2, 4, 16, 16, True, seed=0)
    check(2, 4, 16, 16, False, seed=0)
    # B*K = 10: full-dim single block (the configuration that previously NaN'd).
    check(2, 5, 16, 16, True, seed=1)
    # B*K = 21: tr=16 with a partial last block -> exercises the jnp.where mask.
    check(3, 7, 16, 16, True, seed=2)
    check(3, 7, 16, 16, False, seed=2)
    # bf16 heatmaps (half the HBM traffic; accumulation stays f32 in-kernel).
    check(2, 4, 16, 16, True, dtype=jnp.bfloat16, seed=3)

    print("KERNEL_OK")
</pallas_src>

<mosaic_0001>
module attributes {stable_mosaic.version = 11 : i64} {
  func.func @_kpmse_kernel(%arg0: i32, %arg1: i32, %arg2: memref<8x256xf32, #tpu.memory_space<vmem>>, %arg3: memref<8x256xf32, #tpu.memory_space<vmem>>, %arg4: memref<8x1xf32, #tpu.memory_space<vmem>>, %arg5: memref<1x8x128xf32, #tpu.memory_space<vmem>>, %arg6: memref<1x256xf32, #tpu.memory_space<vmem>>) attributes {dimension_semantics = [#tpu.dimension_semantics<arbitrary>, #tpu.dimension_semantics<arbitrary>], iteration_bounds = array<i64: 1, 1>, scalar_prefetch = 0 : i64, scratch_operands = 1 : i64, tpu.core_type = #tpu.core_type<tc>, window_params = [{transform_indices = @transform_0, window_bounds = array<i64: 8, 256>}, {transform_indices = @transform_1, window_bounds = array<i64: 8, 256>}, {transform_indices = @transform_2, window_bounds = array<i64: 8, 1>}, {transform_indices = @transform_3, window_bounds = array<i64: 1, 8, 128>}]} {
    %c0_i32 = arith.constant 0 : i32
    %0 = arith.cmpi eq, %arg1, %c0_i32 : i32
    %1 = arith.extui %0 : i1 to i32
    %c0_i32_0 = arith.constant 0 : i32
    %2 = arith.cmpi ne, %1, %c0_i32_0 : i32
    scf.if %2 {
      %cst_12 = arith.constant 0.000000e+00 : f32
      %18 = vector.broadcast %cst_12 : f32 to vector<1x256xf32>
      %c0_13 = arith.constant 0 : index
      %c0_14 = arith.constant 0 : index
      %19 = vector.load %arg6[%c0_13, %c0_14] : memref<1x256xf32, #tpu.memory_space<vmem>>, vector<1x256xf32>
      tpu.vector_store %arg6[%c0_13, %c0_14], %18 {strides = array<i32>} : memref<1x256xf32, #tpu.memory_space<vmem>>, vector<1x256xf32>,
    } else {
    }
    %c0 = arith.constant 0 : index
    %c0_1 = arith.constant 0 : index
    %3 = vector.load %arg2[%c0, %c0_1] : memref<8x256xf32, #tpu.memory_space<vmem>>, vector<8x256xf32>
    %c0_2 = arith.constant 0 : index
    %c0_3 = arith.constant 0 : index
    %4 = vector.load %arg3[%c0_2, %c0_3] : memref<8x256xf32, #tpu.memory_space<vmem>>, vector<8x256xf32>
    %5 = arith.subf %3, %4 : vector<8x256xf32>
    %c0_4 = arith.constant 0 : index
    %c0_5 = arith.constant 0 : index
    %6 = vector.load %arg4[%c0_4, %c0_5] : memref<8x1xf32, #tpu.memory_space<vmem>>, vector<8x1xf32>
    %7 = vector.broadcast %6 : vector<8x1xf32> to vector<8x256xf32>
    %8 = arith.mulf %5, %7 : vector<8x256xf32>
    %9 = arith.mulf %8, %8 : vector<8x256xf32>
    %c0_6 = arith.constant 0 : index
    %c0_7 = arith.constant 0 : index
    %10 = vector.load %arg6[%c0_6, %c0_7] : memref<1x256xf32, #tpu.memory_space<vmem>>, vector<1x256xf32>
    %cst = arith.constant dense<0.000000e+00> : vector<256xf32>
    %11 = vector.multi_reduction <add>, %9, %cst [0] : vector<8x256xf32> to vector<256xf32>
    %12 = vector.shape_cast %11 : vector<256xf32> to vector<1x256xf32>
    %13 = arith.addf %10, %12 : vector<1x256xf32>
    %c0_8 = arith.constant 0 : index
    %c0_9 = arith.constant 0 : index
    %14 = vector.load %arg6[%c0_8, %c0_9] : memref<1x256xf32, #tpu.memory_space<vmem>>, vector<1x256xf32>
    tpu.vector_store %arg6[%c0_8, %c0_9], %13 {strides = array<i32>} : memref<1x256xf32, #tpu.memory_space<vmem>>, vector<1x256xf32>,
    %c0_i32_10 = arith.constant 0 : i32
    %15 = arith.cmpi eq, %arg1, %c0_i32_10 : i32
    %16 = arith.extui %15 : i1 to i32
    %c0_i32_11 = arith.constant 0 : i32
    %17 = arith.cmpi ne, %16, %c0_i32_11 : i32
    scf.if %17 {
      %c0_12 = arith.constant 0 : index
      %c0_13 = arith.constant 0 : index
      %18 = vector.load %arg6[%c0_12, %c0_13] : memref<1x256xf32, #tpu.memory_space<vmem>>, vector<1x256xf32>
      %19 = vector.shape_cast %18 : vector<1x256xf32> to vector<1x1x256xf32>
      %cst_14 = arith.constant dense<0.000000e+00> : vector<1xf32>
      %20 = vector.multi_reduction <add>, %19, %cst_14 [1, 2] : vector<1x1x256xf32> to vector<1xf32>
      %21 = vector.shape_cast %20 : vector<1xf32> to vector<1x1x1xf32>
      %22 = vector.extract %21[0, 0, 0] : f32 from vector<1x1x1xf32>
      %23 = vector.broadcast %22 : f32 to vector<1x8x128xf32>
      %c0_15 = arith.constant 0 : index
      %c0_16 = arith.constant 0 : index
      %c0_17 = arith.constant 0 : index
      %24 = vector.load %arg5[%c0_15, %c0_16, %c0_17] : memref<1x8x128xf32, #tpu.memory_space<vmem>>, vector<1x8x128xf32>
      tpu.vector_store %arg5[%c0_15, %c0_16, %c0_17], %23 {strides = array<i32>} : memref<1x8x128xf32, #tpu.memory_space<vmem>>, vector<1x8x128xf32>,
    } else {
    }
    return
  }
  func.func @transform_0(%arg0: i32, %arg1: i32) -> (i32, i32) {
    %c1_i32 = arith.constant 1 : i32
    %0 = arith.muli %arg0, %c1_i32 : i32
    %1 = arith.addi %0, %arg1 : i32
    %c0_i32 = arith.constant 0 : i32
    %c0_i32_0 = arith.constant 0 : i32
    return %1, %c0_i32 : i32, i32
  }
  func.func @transform_1(%arg0: i32, %arg1: i32) -> (i32, i32) {
    %c1_i32 = arith.constant 1 : i32
    %0 = arith.muli %arg0, %c1_i32 : i32
    %1 = arith.addi %0, %arg1 : i32
    %c0_i32 = arith.constant 0 : i32
    %c0_i32_0 = arith.constant 0 : i32
    return %1, %c0_i32 : i32, i32
  }
  func.func @transform_2(%arg0: i32, %arg1: i32) -> (i32, i32) {
    %c1_i32 = arith.constant 1 : i32
    %0 = arith.muli %arg0, %c1_i32 : i32
    %1 = arith.addi %0, %arg1 : i32
    %c0_i32 = arith.constant 0 : i32
    %c0_i32_0 = arith.constant 0 : i32
    return %1, %c0_i32 : i32, i32
  }
  func.func @transform_3(%arg0: i32, %arg1: i32) -> (i32, i32, i32) {
    %c0_i32 = arith.constant 0 : i32
    %c0_i32_0 = arith.constant 0 : i32
    %c0_i32_1 = arith.constant 0 : i32
    return %arg0, %c0_i32, %c0_i32_0 : i32, i32, i32
  }
}

</mosaic_0001>

<bundles_post_ra>
// kernel: tpu_custom_call.1
= control target key start
LH: loop header
LB: loop body
LE: loop exit
PB: predicated region body
PF: predicated region fallthrough
CT: control target
= control target key end

     0   :  { %8 = vsyncpa [#allocation4], 0  ;;  %s334_s0 = inlined_call_operand.hbm [shape: f32[8,256], index: 0, kind: input, shape index: {}]   ;;  %s335_s1 = inlined_call_operand.hbm [shape: f32[8,256], index: 1, kind: input, shape index: {}]   ;;  %s336_s2 = inlined_call_operand.vmem [shape: f32[8,1], index: 2, kind: input, shape index: {}]   ;;  %s337_s3 = inlined_call_operand.hbm [shape: f32[1,8,128], index: 3, kind: output, shape index: {}]  }
   0x1   :  { %9 = vsyncpa [#allocation7], 0 }
   0x2   :  { %10 = vsyncpa [#allocation5], 0  ;;  %s261_s12 = smov [#allocation3]   ;;  %s262_s14 = smov [#allocation6]  }
   0x3   :  { %s21_s13 = sshll.u32 %s261_s12, 4  ;;  %s35_s15 = sshll.u32 %s262_s14, 4  ;;  %s22_s13 = int_to_ptr.vmem [resolvable:$true] %s21_s13  ;;  %s36_s15 = int_to_ptr.vmem [resolvable:$true] %s35_s15 }
   0x4   :  { %s189_s18 = scalar_lea.hbm %s334_s0, 256 }
   0x5   :  { %p190_p0 = scmp.ne.s32.totalorder %s334_s0, %s189_s18  ;;  %p193_p1 = scmp.lt.u32.totalorder %s189_s18, %s334_s0 }
   0x7   :  { %p195_p2 = pnand %p193_p1, %p190_p0 }
   0x9   :  { %198 = shalt.err (!%p195_p2)
}
   0xa   :  { %s199_s23 = scalar_lea.vmem %s22_s13, 256  ;;  %p204_p4 = scmp.lt.s32.totalorder %s22_s13, %s22_s13 }
   0xb   :  { %p200_p3 = scmp.ne.s32.totalorder %s22_s13, %s199_s23  ;;  %p205_p5 = scmp.lt.s32.totalorder %s199_s23, %s199_s23 }
   0xd   :  { %p206_p6 = por %p205_p5, %p204_p4 }
   0xf   :  { %p207_p7 = pnand %p206_p6, %p200_p3 }
  0x11   :  { %210 = shalt.err (!%p207_p7)
}
  0x12   :  { %24 = dma.hbm_to_vmem [thread:$0]  %s334_s0, 256, %s22_s13, [#allocation4]  }
  0x13   :  { %s211_s28 = scalar_lea.hbm %s335_s1, 256 }
  0x14   :  { %p212_p8 = scmp.ne.s32.totalorder %s335_s1, %s211_s28  ;;  %p215_p9 = scmp.lt.u32.totalorder %s211_s28, %s335_s1 }
  0x16   :  { %p217_p10 = pnand %p215_p9, %p212_p8 }
  0x18   :  { %220 = shalt.err (!%p217_p10)
}
  0x19   :  { %s221_s6 = scalar_lea.vmem %s36_s15, 256  ;;  %p226_p12 = scmp.lt.s32.totalorder %s36_s15, %s36_s15 }
  0x1a   :  { %p222_p11 = scmp.ne.s32.totalorder %s36_s15, %s221_s6  ;;  %p227_p13 = scmp.lt.s32.totalorder %s221_s6, %s221_s6 }
  0x1c   :  { %p228_p0 = por %p227_p13, %p226_p12 }
  0x1e   :  { %p229_p1 = pnand %p228_p0, %p222_p11 }
  0x20   :  { %232 = shalt.err (!%p229_p1)
}
  0x21   :  { %38 = dma.hbm_to_vmem [thread:$0]  %s335_s1, 256, %s36_s15, [#allocation7]  }
  0x22   :  { %255 = dma.done.wait [#allocation4], 256  }
  0x23   :  { %256 = vsyncadd [#allocation4], 4294967040 }
  0x24   :  { %257 = dma.done.wait [#allocation7], 256  }
  0x25   :  { %258 = vsyncadd [#allocation7], 4294967040  ;;  %v263_v0 = vmov 0   ;;  %v81_v1 = vld [vmem:[%s336_s2] sm:$0xff]  ;;  %v70_v2 = vlaneseq  ;;  %v264_v4 = vmov 0.0   ;;  %v76_v6 = vld [vmem:[#allocation3 + $0x8] sm:$0xff] }
  0x26   :  { %188 = vset.pattern.permute.xlu0 %v263_v0  ;;  %v75_v5 = vld [vmem:[#allocation3] sm:$0xff]  ;;  %v77_v7 = vld [vmem:[#allocation6] sm:$0xff]  ;;  %v78_v8 = vld [vmem:[#allocation6 + $0x8] sm:$0xff]  ;;  %v265_v20 = vmov 1966171168   ;;  %vm143_vm1 = vcmask 1040384  }
  0x27   :  { %84 = vperm.xlu0 %188, %v81_v1   ;;  %vm314_vm0 = vcmp.lt.s32.totalorder %v70_v2, 256  ;;  %v79_v9 = vsub.f32 %v75_v5, %v77_v7  ;;  %v80_v10 = vsub.f32 %v76_v6, %v78_v8  ;;  %v108_v21 = vunpack.c.l.s4 %v265_v20  ;;  %s266_s1 = smov [#allocation8]  }
  0x28   :  { %74 = vst.msk [vmem:[#allocation2] sm:$0x3] %vm314_vm0, %v264_v4  ;;  %v111_v27 = vshrl.u32 %v70_v2, 7  ;;  %s164_s2 = sshll.u32 %s266_s1, 4  ;;  %s165_s2 = int_to_ptr.vmem [resolvable:$true] %s164_s2 }
  0x29   :  { %v109_v26 = vunpack.c.0.s8 %v108_v21  ;;  %s233_s11 = scalar_lea.vmem %s165_s2, 128  ;;  %p238_p3 = scmp.lt.s32.totalorder %s165_s2, %s165_s2 }
  0x2a   :  { %v135_v38 = vsub.s32 0, %v111_v27  ;;  %v139_v39 = vsub.s32 1, %v111_v27  ;;  %p234_p2 = scmp.ne.s32.totalorder %s165_s2, %s233_s11  ;;  %p239_p4 = scmp.lt.s32.totalorder %s233_s11, %s233_s11 }
  0x2b   :  { %v112_v32 = vsub.s32 %v109_v26, %v111_v27 }
  0x2c   :  { %p240_p5 = por %p239_p4, %p238_p3 }
  0x2e   :  { %p241_p6 = pnand %p240_p5, %p234_p2 }
  0x2f   :  { %v91_v35 = vld [vmem:[#allocation2] sm:$0x3] }
  0xa6   :  { %v85_v11 = vpop.permute.xlu0 %84 }
  0xa7   :  { %v87_v12 = vmul.f32 %v85_v11, %v79_v9  ;;  %v88_v13 = vmul.f32 %v85_v11, %v80_v10 }
  0xa9   :  { %v89_v14 = vmul.f32 %v87_v12, %v87_v12  ;;  %v90_v15 = vmul.f32 %v88_v13, %v88_v13 }
  0xab   :  { %v92_v16 = vrot.slane %v89_v14, 4  ;;  %v98_v17 = vrot.slane %v90_v15, 4 }
  0xad   :  { %v93_v18 = vadd.f32 %v92_v16, %v89_v14  ;;  %v99_v19 = vadd.f32 %v98_v17, %v90_v15 }
  0xaf   :  { %v94_v22 = vrot.slane %v93_v18, 2  ;;  %v100_v23 = vrot.slane %v99_v19, 2 }
  0xb1   :  { %v95_v24 = vadd.f32 %v94_v22, %v93_v18  ;;  %v101_v25 = vadd.f32 %v100_v23, %v99_v19 }
  0xb3   :  { %v96_v28 = vrot.slane %v95_v24, 1  ;;  %v102_v29 = vrot.slane %v101_v25, 1 }
  0xb5   :  { %v97_v30 = vadd.f32 %v96_v28, %v95_v24  ;;  %v103_v31 = vadd.f32 %v102_v29, %v101_v25 }
  0xb7   :  { %v106_v33 = vcombine.low %v97_v30, %v103_v31 }
  0xb9   :  { %v113_v34 = vrot.slane %v106_v33, %v112_v32 }
  0xbb   :  { %v120_v36 = vrot.slane %v113_v34, %v112_v32 }
  0xbd   :  { %v122_v37 = vadd.f32 %v120_v36, %v91_v35 }
  0xbf   :  { %127 = vst.msk [vmem:[#allocation2] sm:$0x3] %vm314_vm0, %v122_v37 }
  0xc6   :  { %v131_v40 = vld [vmem:[#allocation2] sm:$0x3] }
  0xc7   :  { %v136_v41 = vrot.slane %v131_v40, %v135_v38  ;;  %v140_v42 = vrot.slane %v131_v40, %v139_v39 }
  0xc9   :  { %v144_v43 = vsel %vm143_vm1, %v136_v41, 0.0  ;;  %v145_v44 = vsel %vm143_vm1, %v140_v42, 0.0 }
  0xca   :  { %v146_v45 = vadd.f32 %v145_v44, %v144_v43 }
  0xcc   :  { %147 = vadd.xlane.f32.xlu0 %v146_v45 }
 0x159   :  { %v148_v46 = vpop.xlane.xlu0 %147 }
 0x15a   :  { %v149_v47 = vrot.slane %v148_v46, 4 }
 0x15c   :  { %v150_v48 = vadd.f32 %v149_v47, %v148_v46 }
 0x15e   :  { %v151_v49 = vrot.slane %v150_v48, 2 }
 0x160   :  { %v152_v50 = vadd.f32 %v151_v49, %v150_v48 }
 0x162   :  { %v153_v51 = vrot.slane %v152_v50, 1 }
 0x164   :  { %v154_v52 = vadd.f32 %v153_v51, %v152_v50 }
 0x166   :  { %180 = vpush %v154_v52 }
 0x197   :  { %s181_s10 = spop %180 }
 0x198   :  { %v156_v53 = vstv %s181_s10 }
 0x199   :  { %157 = vst [vmem:[#allocation8] sm:$0xff] %v156_v53 }
 0x19a   :  { %244 = shalt.err (!%p241_p6)
}
 0x19b   :  { %s245_s14 = scalar_lea.hbm %s337_s3, 128 }
 0x19c   :  { %p246_p7 = scmp.ne.s32.totalorder %s337_s3, %s245_s14  ;;  %p249_p8 = scmp.lt.u32.totalorder %s245_s14, %s337_s3 }
 0x19e   :  { %p251_p9 = pnand %p249_p8, %p246_p7 }
 0x1a0   :  { %254 = shalt.err (!%p251_p9)
}
 0x1a1   :  { %167 = dma.vmem_to_hbm [thread:$0]  %s165_s2, 128, %s337_s3, [#allocation5]  }
 0x1a2   :  { %259 = dma.done.wait [#allocation5], 128  }
 0x1a3   :  { %260 = vsyncadd [#allocation5], 4294967168 }
 0x1a4   :  { %171 = vsyncpa [#allocation4], 1 }
 0x1a5   :  { %172 = vsyncpa [#allocation7], 1 }
 0x1a6   :  { %173 = vsyncpa [#allocation5], 1 }

</bundles_post_ra>
